<compile_context>
chip_gen: v6e
topology: v6e:2x2x1
jax: 0.10.0
libtpu: 0.0.40
codegen_flags: <defaults>
</compile_context>

<pallas_src>
import functools

import jax
import jax.numpy as jnp
from jax.experimental import pallas as pl
from jax.experimental.pallas import tpu as pltpu

G_DROPOUT = 0.2


def _pick_tile(n, target, align):
    """Largest divisor of n that is <= target and `align`-aligned, else n."""
    if n <= target:
        return n
    for t in range(target, 0, -1):
        if n % t == 0 and t % align == 0:
            return t
    return n  # fall back to the full dimension (always a legal block)


def _ffn_kernel(*refs, n_h_tiles, has_mask):
    if has_mask:
        x_ref, w1_ref, b1_ref, w2_ref, b2_ref, mask_ref, o_ref, acc_ref = refs
    else:
        x_ref, w1_ref, b1_ref, w2_ref, b2_ref, o_ref, acc_ref = refs
        mask_ref = None

    h_idx = pl.program_id(1)

    @pl.when(h_idx == 0)
    def _():
        acc_ref[...] = jnp.zeros_like(acc_ref)

    # First linear + ReLU on this hidden-dim slice (bf16 MXU, f32 accumulate).
    x_bf = x_ref[...].astype(jnp.bfloat16)
    h = jnp.dot(x_bf, w1_ref[...], preferred_element_type=jnp.float32)
    h = jnp.maximum(h + b1_ref[...], 0.0)

    # Second linear: accumulate this slice's contribution (exact, since ReLU
    # is elementwise over the hidden dim).
    acc_ref[...] += jnp.dot(h.astype(jnp.bfloat16), w2_ref[...],
                            preferred_element_type=jnp.float32)

    @pl.when(h_idx == n_h_tiles - 1)
    def _():
        y = acc_ref[...] + b2_ref[...]
        if mask_ref is not None:
            # Inverted dropout: mask is 0 or 1/(1-p), so one VPU multiply.
            y = y * mask_ref[...].astype(jnp.float32)
        o_ref[...] = y.astype(o_ref.dtype)


def feed_forward(x, w1, b1, w2, b2, *, seed=0, training=True,
                 dropout_p=G_DROPOUT, tile_m=256, tile_h=512):
    """x: [B, T, W]; w1: [W, 4W]; b1: [4W]; w2: [4W, W]; b2: [W]."""
    B, T, W = x.shape
    H = w1.shape[1]
    M = B * T

    tm = _pick_tile(M, tile_m, 8)
    th = _pick_tile(H, tile_h, 128)
    n_m, n_h = M // tm, H // th

    x2d = x.reshape(M, W)
    w1_bf = w1.astype(jnp.bfloat16)          # weights cast once, halves VMEM/DMA
    w2_bf = w2.astype(jnp.bfloat16)
    b1_2d = b1.reshape(1, H).astype(jnp.float32)
    b2_2d = b2.reshape(1, W).astype(jnp.float32)

    has_mask = bool(training) and dropout_p > 0.0

    inputs = [x2d, w1_bf, b1_2d, w2_bf, b2_2d]
    in_specs = [
        pl.BlockSpec((tm, W), lambda i, h: (i, 0)),   # x tile
        pl.BlockSpec((W, th), lambda i, h: (0, h)),   # W1 slice
        pl.BlockSpec((1, th), lambda i, h: (0, h)),   # b1 slice
        pl.BlockSpec((th, W), lambda i, h: (h, 0)),   # W2 slice
        pl.BlockSpec((1, W),  lambda i, h: (0, 0)),   # b2
    ]
    if has_mask:
        keep = jax.random.bernoulli(jax.random.PRNGKey(seed),
                                    1.0 - dropout_p, (M, W))
        scale = 1.0 / (1.0 - dropout_p)
        mask = (keep.astype(jnp.float32) * scale).astype(jnp.bfloat16)
        inputs.append(mask)
        in_specs.append(pl.BlockSpec((tm, W), lambda i, h: (i, 0)))

    kernel = functools.partial(_ffn_kernel, n_h_tiles=n_h, has_mask=has_mask)

    itemsize = x2d.dtype.itemsize
    cost = pl.CostEstimate(
        flops=4 * M * W * H,
        transcendentals=0,
        bytes_accessed=(M * W * itemsize            # x
                        + 2 * W * H * 2 * n_m       # bf16 weights (re-streamed per m-tile)
                        + (H + W) * 4               # biases
                        + M * W * itemsize          # out
                        + (M * W * 2 if has_mask else 0)))

    out2d = pl.pallas_call(
        kernel,
        out_shape=jax.ShapeDtypeStruct((M, W), x.dtype),
        grid_spec=pltpu.PrefetchScalarGridSpec(
            num_scalar_prefetch=0,
            grid=(n_m, n_h),
            in_specs=in_specs,
            out_specs=pl.BlockSpec((tm, W), lambda i, h: (i, 0)),
            scratch_shapes=[pltpu.VMEM((tm, W), jnp.float32)],
        ),
        compiler_params=pltpu.CompilerParams(
            dimension_semantics=("parallel", "arbitrary"),
            vmem_limit_bytes=48 * 1024 * 1024),
        cost_estimate=cost,
    )(*inputs)

    return out2d.reshape(B, T, W)


def _init_params(key, width):
    """Deterministic init mimicking PyTorch Linear default U[-1/sqrt(fan_in), +]."""
    hidden = 4 * width
    k1, k2, k3, k4 = jax.random.split(key, 4)
    bound1 = 1.0 / (width ** 0.5)
    bound2 = 1.0 / (hidden ** 0.5)
    # Stored as (in_features, out_features) == torch weight transposed.
    w1 = jax.random.uniform(k1, (width, hidden), jnp.float32, -bound1, bound1)
    b1 = jax.random.uniform(k2, (hidden,), jnp.float32, -bound1, bound1)
    w2 = jax.random.uniform(k3, (hidden, width), jnp.float32, -bound2, bound2)
    b2 = jax.random.uniform(k4, (width,), jnp.float32, -bound2, bound2)
    return w1, b1, w2, b2


if __name__ == "__main__":
    key = jax.random.PRNGKey(0)
    B, T, width = 2, 8, 32

    k_x, k_p = jax.random.split(key)
    x = jax.random.normal(k_x, (B, T, width), dtype=jnp.float32)
    w1, b1, w2, b2 = _init_params(k_p, width)

    # Training-mode run (dropout active).
    out = feed_forward(x, w1, b1, w2, b2, seed=1234, training=True)
    out = jax.block_until_ready(out)
    assert out.shape == (B, T, width)

    # Eval-mode sanity check against a bf16-matmul / f32-accumulate reference.
    out_eval = jax.block_until_ready(
        feed_forward(x, w1, b1, w2, b2, training=False))
    x2d = x.reshape(-1, width)
    h_ref = jnp.maximum(
        jnp.dot(x2d.astype(jnp.bfloat16), w1.astype(jnp.bfloat16),
                preferred_element_type=jnp.float32) + b1, 0.0)
    ref = jnp.dot(h_ref.astype(jnp.bfloat16), w2.astype(jnp.bfloat16),
                  preferred_element_type=jnp.float32) + b2
    assert jnp.allclose(out_eval.reshape(-1, width), ref, atol=2e-2, rtol=2e-2)

    print("KERNEL_OK")
</pallas_src>

<mosaic_0001>
module attributes {stable_mosaic.version = 11 : i64} {
  func.func @_ffn_kernel(%arg0: i32, %arg1: i32, %arg2: memref<16x32xf32, #tpu.memory_space<vmem>>, %arg3: memref<32x128xbf16, #tpu.memory_space<vmem>>, %arg4: memref<1x128xf32, #tpu.memory_space<vmem>>, %arg5: memref<128x32xbf16, #tpu.memory_space<vmem>>, %arg6: memref<1x32xf32, #tpu.memory_space<vmem>>, %arg7: memref<16x32xbf16, #tpu.memory_space<vmem>>, %arg8: memref<16x32xf32, #tpu.memory_space<vmem>>, %arg9: memref<16x32xf32, #tpu.memory_space<vmem>>) attributes {dimension_semantics = [#tpu.dimension_semantics<parallel>, #tpu.dimension_semantics<arbitrary>], iteration_bounds = array<i64: 1, 1>, scalar_prefetch = 0 : i64, scratch_operands = 1 : i64, tpu.core_type = #tpu.core_type<tc>, window_params = [{transform_indices = @transform_0, window_bounds = array<i64: 16, 32>}, {transform_indices = @transform_1, window_bounds = array<i64: 32, 128>}, {transform_indices = @transform_2, window_bounds = array<i64: 1, 128>}, {transform_indices = @transform_3, window_bounds = array<i64: 128, 32>}, {pipeline_mode = #tpu.pipeline_mode<synchronous>, transform_indices = @transform_4, window_bounds = array<i64: 1, 32>}, {transform_indices = @transform_5, window_bounds = array<i64: 16, 32>}, {transform_indices = @transform_6, window_bounds = array<i64: 16, 32>}]} {
    %c0_i32 = arith.constant 0 : i32
    %0 = arith.cmpi eq, %arg1, %c0_i32 : i32
    %1 = arith.extui %0 : i1 to i32
    %c0_i32_0 = arith.constant 0 : i32
    %2 = arith.cmpi ne, %1, %c0_i32_0 : i32
    scf.if %2 {
      %cst_16 = arith.constant 0.000000e+00 : f32
      %21 = vector.broadcast %cst_16 : f32 to vector<16x32xf32>
      %c0_17 = arith.constant 0 : index
      %c0_18 = arith.constant 0 : index
      %22 = vector.load %arg9[%c0_17, %c0_18] : memref<16x32xf32, #tpu.memory_space<vmem>>, vector<16x32xf32>
      tpu.vector_store %arg9[%c0_17, %c0_18], %21 {strides = array<i32>} : memref<16x32xf32, #tpu.memory_space<vmem>>, vector<16x32xf32>,
    } else {
    }
    %c0 = arith.constant 0 : index
    %c0_1 = arith.constant 0 : index
    %3 = vector.load %arg2[%c0, %c0_1] : memref<16x32xf32, #tpu.memory_space<vmem>>, vector<16x32xf32>
    %4 = arith.truncf %3 : vector<16x32xf32> to vector<16x32xbf16>
    %c0_2 = arith.constant 0 : index
    %c0_3 = arith.constant 0 : index
    %5 = vector.load %arg3[%c0_2, %c0_3] : memref<32x128xbf16, #tpu.memory_space<vmem>>, vector<32x128xbf16>
    %cst = arith.constant dense<0.000000e+00> : vector<16x128xf32>
    %6 = tpu.matmul %4, %5, %cst {dimension_numbers = #tpu.dot_dimension_numbers<[1], [0], [0], [1], [0, 0, 1, 1], [], []>} : vector<16x32xbf16>, vector<32x128xbf16>, vector<16x128xf32> -> vector<16x128xf32>
    %c0_4 = arith.constant 0 : index
    %c0_5 = arith.constant 0 : index
    %7 = vector.load %arg4[%c0_4, %c0_5] : memref<1x128xf32, #tpu.memory_space<vmem>>, vector<1x128xf32>
    %8 = vector.broadcast %7 : vector<1x128xf32> to vector<16x128xf32>
    %9 = arith.addf %6, %8 : vector<16x128xf32>
    %cst_6 = arith.constant 0.000000e+00 : f32
    %10 = vector.broadcast %cst_6 : f32 to vector<16x128xf32>
    %11 = arith.maximumf %9, %10 : vector<16x128xf32>
    %c0_7 = arith.constant 0 : index
    %c0_8 = arith.constant 0 : index
    %12 = vector.load %arg9[%c0_7, %c0_8] : memref<16x32xf32, #tpu.memory_space<vmem>>, vector<16x32xf32>
    %13 = arith.truncf %11 : vector<16x128xf32> to vector<16x128xbf16>
    %c0_9 = arith.constant 0 : index
    %c0_10 = arith.constant 0 : index
    %14 = vector.load %arg5[%c0_9, %c0_10] : memref<128x32xbf16, #tpu.memory_space<vmem>>, vector<128x32xbf16>
    %cst_11 = arith.constant dense<0.000000e+00> : vector<16x32xf32>
    %15 = tpu.matmul %13, %14, %cst_11 {dimension_numbers = #tpu.dot_dimension_numbers<[1], [0], [0], [1], [0, 0, 1, 1], [], []>} : vector<16x128xbf16>, vector<128x32xbf16>, vector<16x32xf32> -> vector<16x32xf32>
    %16 = arith.addf %12, %15 : vector<16x32xf32>
    %c0_12 = arith.constant 0 : index
    %c0_13 = arith.constant 0 : index
    %17 = vector.load %arg9[%c0_12, %c0_13] : memref<16x32xf32, #tpu.memory_space<vmem>>, vector<16x32xf32>
    tpu.vector_store %arg9[%c0_12, %c0_13], %16 {strides = array<i32>} : memref<16x32xf32, #tpu.memory_space<vmem>>, vector<16x32xf32>,
    %c0_i32_14 = arith.constant 0 : i32
    %18 = arith.cmpi eq, %arg1, %c0_i32_14 : i32
    %19 = arith.extui %18 : i1 to i32
    %c0_i32_15 = arith.constant 0 : i32
    %20 = arith.cmpi ne, %19, %c0_i32_15 : i32
    scf.if %20 {
      %c0_16 = arith.constant 0 : index
      %c0_17 = arith.constant 0 : index
      %21 = vector.load %arg9[%c0_16, %c0_17] : memref<16x32xf32, #tpu.memory_space<vmem>>, vector<16x32xf32>
      %c0_18 = arith.constant 0 : index
      %c0_19 = arith.constant 0 : index
      %22 = vector.load %arg6[%c0_18, %c0_19] : memref<1x32xf32, #tpu.memory_space<vmem>>, vector<1x32xf32>
      %23 = vector.broadcast %22 : vector<1x32xf32> to vector<16x32xf32>
      %24 = arith.addf %21, %23 : vector<16x32xf32>
      %c0_20 = arith.constant 0 : index
      %c0_21 = arith.constant 0 : index
      %25 = vector.load %arg7[%c0_20, %c0_21] : memref<16x32xbf16, #tpu.memory_space<vmem>>, vector<16x32xbf16>
      %26 = arith.extf %25 : vector<16x32xbf16> to vector<16x32xf32>
      %27 = arith.mulf %24, %26 : vector<16x32xf32>
      %c0_22 = arith.constant 0 : index
      %c0_23 = arith.constant 0 : index
      %28 = vector.load %arg8[%c0_22, %c0_23] : memref<16x32xf32, #tpu.memory_space<vmem>>, vector<16x32xf32>
      tpu.vector_store %arg8[%c0_22, %c0_23], %27 {strides = array<i32>} : memref<16x32xf32, #tpu.memory_space<vmem>>, vector<16x32xf32>,
    } else {
    }
    return
  }
  func.func @transform_0(%arg0: i32, %arg1: i32) -> (i32, i32) {
    %c0_i32 = arith.constant 0 : i32
    %c0_i32_0 = arith.constant 0 : i32
    return %arg0, %c0_i32 : i32, i32
  }
  func.func @transform_1(%arg0: i32, %arg1: i32) -> (i32, i32) {
    %c0_i32 = arith.constant 0 : i32
    %c0_i32_0 = arith.constant 0 : i32
    return %c0_i32, %arg1 : i32, i32
  }
  func.func @transform_2(%arg0: i32, %arg1: i32) -> (i32, i32) {
    %c0_i32 = arith.constant 0 : i32
    %c0_i32_0 = arith.constant 0 : i32
    return %c0_i32, %arg1 : i32, i32
  }
  func.func @transform_3(%arg0: i32, %arg1: i32) -> (i32, i32) {
    %c0_i32 = arith.constant 0 : i32
    %c0_i32_0 = arith.constant 0 : i32
    return %arg1, %c0_i32 : i32, i32
  }
  func.func @transform_4(%arg0: i32, %arg1: i32) -> (i32, i32) {
    %c0_i32 = arith.constant 0 : i32
    %c0_i32_0 = arith.constant 0 : i32
    %c0_i32_1 = arith.constant 0 : i32
    return %c0_i32, %c0_i32_0 : i32, i32
  }
  func.func @transform_5(%arg0: i32, %arg1: i32) -> (i32, i32) {
    %c0_i32 = arith.constant 0 : i32
    %c0_i32_0 = arith.constant 0 : i32
    return %arg0, %c0_i32 : i32, i32
  }
  func.func @transform_6(%arg0: i32, %arg1: i32) -> (i32, i32) {
    %c0_i32 = arith.constant 0 : i32
    %c0_i32_0 = arith.constant 0 : i32
    return %arg0, %c0_i32 : i32, i32
  }
}

</mosaic_0001>

<bundles_post_ra>
// kernel: tpu_custom_call.1
= control target key start
LH: loop header
LB: loop body
LE: loop exit
PB: predicated region body
PF: predicated region fallthrough
CT: control target
= control target key end

     0   :  { %v349_v1 = vmov 0.0   ;;  %vm350_vm0 = vmmov 0   ;;  %vm29_vm1 = vcmask 261120   ;;  %s444_s0 = inlined_call_operand.vmem [shape: f32[16,32], index: 0, kind: input, shape index: {}]   ;;  %s445_s1 = inlined_call_operand.vmem [shape: bf16[32,128], index: 1, kind: input, shape index: {}]   ;;  %s446_s2 = inlined_call_operand.vmem [shape: f32[1,128], index: 2, kind: input, shape index: {}]   ;;  %s447_s3 = inlined_call_operand.vmem [shape: bf16[128,32], index: 3, kind: input, shape index: {}]   ;;  %s448_s4 = inlined_call_operand.vmem [shape: f32[1,32], index: 4, kind: input, shape index: {}]   ;;  %s449_s5 = inlined_call_operand.vmem [shape: bf16[16,32], index: 5, kind: input, shape index: {}]   ;;  %s450_s6 = inlined_call_operand.hbm [shape: f32[16,32], index: 6, kind: output, shape index: {}]  }
   0x1   :  { %v317_v0 = vld [vmem:[%s445_s1 + $0x8] sm:$0xff]   ;;  %284 = vmatprep.subr.bf16.mxu0 %v349_v1  ;;  %v318_v2 = vld [vmem:[%s445_s1] sm:$0xff]   ;;  %292 = vmatprep.subr.bf16.mxu1 %v349_v1  ;;  %30 = vst.msk [vmem:[#allocation2] sm:$0xff] %vm29_vm1, %v349_v1  ;;  %31 = vst.msk [vmem:[#allocation2 + $0x8] sm:$0xff] %vm29_vm1, %v349_v1 }
   0x2   :  { %285 = vmatpush3.bf16.msra.mxu0 %v317_v0  ;;  %288 = vmatprep.mubr.msk.bf16.mxu0 %vm350_vm0, %v349_v1  ;;  %v32_v3 = vld [vmem:[%s444_s0] sm:$0xff]  ;;  %v33_v4 = vld [vmem:[%s444_s0 + $0x8] sm:$0xff]  ;;  %v319_v5 = vld [vmem:[%s447_s3 + $0x38] sm:$0xff]  }
   0x3   :  { %286 = vmatprep.subr.bf16.mxu0 %v349_v1  ;;  %308 = vmatprep.mubr.msk.bf16.mxu1 %vm350_vm0, %v349_v1  ;;  %v34_v6 = vpack.c.bf16 %v33_v4, %v32_v3  ;;  %v320_v7 = vld [vmem:[%s447_s3 + $0x30] sm:$0xff]   ;;  %v321_v8 = vld [vmem:[%s447_s3 + $0x28] sm:$0xff]  }
   0x4   :  { %293 = vmatpush3.bf16.msra.mxu1 %v319_v5 }
   0x5   :  { %294 = vmatprep.subr.bf16.mxu1 %v349_v1 }
   0x6   :  { %287 = vmatpush3.bf16.msra.mxu0 %v318_v2 }
   0x8   :  { %295 = vmatpush3.bf16.msra.mxu1 %v320_v7 }
   0x9   :  { %289 = vmatmul.mubr.msk.bf16.vlgmr.msra.gmra.mxu0 %vm29_vm1, %v34_v6  ;;  %296 = vmatprep.subr.bf16.mxu1 %v349_v1 }
   0xa   :  { %11 = vsyncpa [#allocation4], 0  ;;  %v322_v9 = vld [vmem:[%s447_s3 + $0x20] sm:$0xff]   ;;  %v323_v10 = vld [vmem:[%s447_s3 + $0x18] sm:$0xff]   ;;  %s351_s23 = smov [#allocation3]  }
   0xb   :  { %v324_v11 = vld [vmem:[%s447_s3 + $0x10] sm:$0xff]   ;;  %v325_v12 = vld [vmem:[%s447_s3 + $0x8] sm:$0xff]   ;;  %v326_v13 = vld [vmem:[%s447_s3] sm:$0xff]   ;;  %s244_s24 = sshll.u32 %s351_s23, 4  ;;  %s245_s24 = int_to_ptr.vmem [resolvable:$true] %s244_s24 }
   0xc   :  { %297 = vmatpush3.bf16.msra.mxu1 %v321_v8  ;;  %v255_v14 = vld [vmem:[%s446_s2] ss:$0 sm:$0xff]  ;;  %v106_v28 = vld [vmem:[#allocation2 + $0x8] sm:$0xff]  ;;  %p332_p1 = scmp.lt.s32.totalorder %s245_s24, %s245_s24 }
   0xd   :  { %298 = vmatprep.subr.bf16.mxu1 %v349_v1  ;;  %v105_v24 = vld [vmem:[#allocation2] sm:$0xff] }
   0xe   :  { %v269_v32 = vld [vmem:[%s449_s5] sm:$0xff]   ;;  %s327_s5 = scalar_lea.vmem %s245_s24, 256 }
   0xf   :  { %v267_v33 = vld [vmem:[%s448_s4] ss:$0 sm:$0xff]  ;;  %v270_v34 = vunpack.c.l.bf16 %v269_v32  ;;  %v271_v37 = vunpack.c.h.bf16 %v269_v32  ;;  %p328_p0 = scmp.ne.s32.totalorder %s245_s24, %s327_s5  ;;  %p333_p2 = scmp.lt.s32.totalorder %s327_s5, %s327_s5 }
  0x10   :  { %299 = vmatpush3.bf16.msra.mxu1 %v322_v9 }
  0x11   :  { %300 = vmatprep.subr.bf16.mxu1 %v349_v1  ;;  %p334_p3 = por %p333_p2, %p332_p1 }
  0x13   :  { %p335_p4 = pnand %p334_p3, %p328_p0 }
  0x14   :  { %301 = vmatpush3.bf16.msra.mxu1 %v323_v10 }
  0x15   :  { %302 = vmatprep.subr.bf16.mxu1 %v349_v1 }
  0x18   :  { %303 = vmatpush3.bf16.msra.mxu1 %v324_v11 }
  0x19   :  { %304 = vmatprep.subr.bf16.mxu1 %v349_v1 }
  0x1c   :  { %305 = vmatpush3.bf16.msra.mxu1 %v325_v12 }
  0x1d   :  { %306 = vmatprep.subr.bf16.mxu1 %v349_v1 }
  0x20   :  { %307 = vmatpush3.bf16.msra.mxu1 %v326_v13 }
  0xc9   :  { %v96_v15 = vpop.f32.mrf.mxu0 }
  0xca   :  { %v97_v17 = vadd.f32 %v255_v14, %v96_v15 }
  0xcb   :  { %v290_v16 = vpop.f32.mrf.mxu0 }
  0xcc   :  { %v103_v21 = vmax.f32 %v97_v17, 0.0 }
  0xcd   :  { %v99_v18 = vpop.f32.mrf.mxu0 }
  0xce   :  { %v100_v19 = vadd.f32 %v255_v14, %v99_v18 }
  0xcf   :  { %v291_v20 = vpop.f32.mrf.mxu0 }
  0xd0   :  { %v104_v22 = vmax.f32 %v100_v19, 0.0 }
  0xd2   :  { %v107_v23 = vpack.c.bf16 %v104_v22, %v103_v21 }
  0xd4   :  { %309 = vmatmul.mubr.bf16.vlgmr.msra.gmra.mxu1 %v107_v23 }
 0x194   :  { %v206_v25 = vpop.f32.mrf.mxu1 }
 0x195   :  { %v213_v26 = vadd.f32 %v206_v25, %v105_v24 }
 0x196   :  { %v310_v27 = vpop.f32.mrf.mxu1 }
 0x197   :  { %215 = vst.msk [vmem:[#allocation2] sm:$0xff] %vm29_vm1, %v213_v26 }
 0x198   :  { %v209_v29 = vpop.f32.mrf.mxu1 }
 0x199   :  { %v214_v30 = vadd.f32 %v209_v29, %v106_v28 }
 0x19a   :  { %v311_v31 = vpop.f32.mrf.mxu1 }
 0x19b   :  { %216 = vst.msk [vmem:[#allocation2 + $0x8] sm:$0xff] %vm29_vm1, %v214_v30 }
 0x19e   :  { %v220_v35 = vld [vmem:[#allocation2] sm:$0xff] }
 0x19f   :  { %v229_v36 = vadd.f32 %v267_v33, %v220_v35 }
 0x1a1   :  { %v235_v38 = vmul.f32 %v270_v34, %v229_v36 }
 0x1a2   :  { %v221_v39 = vld [vmem:[#allocation2 + $0x8] sm:$0xff] }
 0x1a3   :  { %v230_v40 = vadd.f32 %v267_v33, %v221_v39  ;;  %237 = vst.msk [vmem:[#allocation3] sm:$0xff] %vm29_vm1, %v235_v38 }
 0x1a5   :  { %v236_v41 = vmul.f32 %v271_v37, %v230_v40 }
 0x1a7   :  { %238 = vst.msk [vmem:[#allocation3 + $0x8] sm:$0xff] %vm29_vm1, %v236_v41 }
 0x1a8   :  { %338 = shalt.err (!%p335_p4)
}
 0x1a9   :  { %s352_s4 = smov 128   ;;  %s353_s25 = smov 8  }
 0x1aa   :  { %250 = dma.vmem_to_hbm [thread:$0]  %s245_s24, 256, %s450_s6, [#allocation4], %s352_s4, %s352_s4, %s353_s25  }
 0x1ab   :  { %347 = dma.done.wait [#allocation4], 256  }
 0x1ac   :  { %348 = vsyncadd [#allocation4], 4294967040 }
 0x1ad   :  { %254 = vsyncpa [#allocation4], 1 }

</bundles_post_ra>
